<compile_context>
chip_gen: v6e
topology: v6e:2x2x1
jax: 0.10.0
libtpu: 0.0.40
codegen_flags: <defaults>
</compile_context>

<pallas_src>
import jax
import jax.numpy as jnp
from jax.experimental import pallas as pl
from jax.experimental.pallas import tpu as pltpu

_LANE = 128
_SUBLANE = 8


def _tile_params():
    """(target tile bytes per stream, scoped vmem limit) per TPU generation."""
    try:
        kind = jax.devices()[0].device_kind.lower()
    except Exception:
        kind = ""
    if "v5" in kind:
        return 2 << 20, 32 << 20      # ~0.8 TB/s: bigger tiles buy nothing
    if "v6" in kind:
        return 4 << 20, 48 << 20      # 128 MiB physical VMEM
    if "v7" in kind or "7x" in kind:
        return 4 << 20, 40 << 20      # 64 MiB physical VMEM -> keep headroom
    return 2 << 20, 32 << 20          # conservative default


# ----------------------------- kernel bodies --------------------------------

def _fused_kernel_3d(s_ref, res_ref, x_ref, o_ref):
    # res/x/o: (1, rt, 128) blocks; s_ref: (B,) float32 scalars in SMEM.
    s = s_ref[pl.program_id(0)]
    o_ref[...] = (res_ref[...].astype(jnp.float32)
                  + x_ref[...].astype(jnp.float32) * s).astype(o_ref.dtype)


def _scale_kernel_3d(s_ref, x_ref, o_ref):
    s = s_ref[pl.program_id(0)]
    o_ref[...] = (x_ref[...].astype(jnp.float32) * s).astype(o_ref.dtype)


def _fused_kernel_2d(res_ref, x_ref, s_ref, o_ref):
    # Rare fallback (M not a multiple of 128). s_ref: (bt, 1) f32 in VMEM.
    o_ref[...] = (res_ref[...].astype(jnp.float32)
                  + x_ref[...].astype(jnp.float32) * s_ref[...]).astype(o_ref.dtype)


def _scale_kernel_2d(x_ref, s_ref, o_ref):
    o_ref[...] = (x_ref[...].astype(jnp.float32) * s_ref[...]).astype(o_ref.dtype)


# ----------------------------- tiling helpers -------------------------------

def _flat_dims(shape):
    B = int(shape[0])
    M = 1
    for d in shape[1:]:
        M *= int(d)
    return B, M


def _tiling_3d(B, M, itemsize, tile_bytes):
    R = M // _LANE
    rt = max(_SUBLANE, (tile_bytes // (_LANE * itemsize)) // _SUBLANE * _SUBLANE)
    if rt >= R:
        rt = R                       # full dim is always a legal block extent
    return R, rt, (B, pl.cdiv(R, rt))


def _tiling_2d(B, M, itemsize, tile_bytes):
    bt = _SUBLANE if B >= _SUBLANE else B
    mt = max(_LANE, (tile_bytes // (bt * itemsize)) // _LANE * _LANE)
    if mt >= M:
        mt = M
    return bt, mt, (pl.cdiv(B, bt), pl.cdiv(M, mt))


# ----------------------------- pallas dispatch -------------------------------

def _scaled_residual_add_impl(res, x, scale):
    """out = res + x * scale[b]  (fused residual + DropPath)."""
    shape = x.shape
    B, M = _flat_dims(shape)
    itemsize = jnp.dtype(x.dtype).itemsize
    tile_bytes, vmem_limit = _tile_params()
    cparams = pltpu.CompilerParams(
        dimension_semantics=("parallel", "parallel"),
        vmem_limit_bytes=vmem_limit)

    if M % _LANE == 0:
        # Lane/sublane dense (B, R, 128) view; per-sample scale from SMEM.
        R, rt, grid = _tiling_3d(B, M, itemsize, tile_bytes)
        blk = pl.BlockSpec((1, rt, _LANE), lambda b, r, s: (b, r, 0))
        out = pl.pallas_call(
            _fused_kernel_3d,
            out_shape=jax.ShapeDtypeStruct((B, R, _LANE), x.dtype),
            grid_spec=pltpu.PrefetchScalarGridSpec(
                num_scalar_prefetch=1, grid=grid,
                in_specs=[blk, blk], out_specs=blk),
            compiler_params=cparams,
            # Donate one of the (same-shaped) activation streams to the output.
            input_output_aliases={1: 0},
        )(scale, res.reshape(B, R, _LANE), x.reshape(B, R, _LANE))
        return out.reshape(shape)

    # Rare fallback: per-sample slab not a multiple of 128 elements.
    bt, mt, grid = _tiling_2d(B, M, itemsize, tile_bytes)
    blk = pl.BlockSpec((bt, mt), lambda i, j: (i, j))
    out = pl.pallas_call(
        _fused_kernel_2d,
        out_shape=jax.ShapeDtypeStruct((B, M), x.dtype),
        grid_spec=pltpu.PrefetchScalarGridSpec(
            num_scalar_prefetch=0, grid=grid,
            in_specs=[blk, blk, pl.BlockSpec((bt, 1), lambda i, j: (i, 0))],
            out_specs=blk),
        compiler_params=cparams,
        input_output_aliases={1: 0},
    )(res.reshape(B, M), x.reshape(B, M), scale.reshape(B, 1))
    return out.reshape(shape)


def _scaled_mul_impl(x, scale):
    """out = x * scale[b]  (plain DropPath; also the VJP of both ops)."""
    shape = x.shape
    B, M = _flat_dims(shape)
    itemsize = jnp.dtype(x.dtype).itemsize
    tile_bytes, vmem_limit = _tile_params()
    cparams = pltpu.CompilerParams(
        dimension_semantics=("parallel", "parallel"),
        vmem_limit_bytes=vmem_limit)

    if M % _LANE == 0:
        R, rt, grid = _tiling_3d(B, M, itemsize, tile_bytes)
        blk = pl.BlockSpec((1, rt, _LANE), lambda b, r, s: (b, r, 0))
        out = pl.pallas_call(
            _scale_kernel_3d,
            out_shape=jax.ShapeDtypeStruct((B, R, _LANE), x.dtype),
            grid_spec=pltpu.PrefetchScalarGridSpec(
                num_scalar_prefetch=1, grid=grid,
                in_specs=[blk], out_specs=blk),
            compiler_params=cparams,
        )(scale, x.reshape(B, R, _LANE))
        return out.reshape(shape)

    bt, mt, grid = _tiling_2d(B, M, itemsize, tile_bytes)
    blk = pl.BlockSpec((bt, mt), lambda i, j: (i, j))
    out = pl.pallas_call(
        _scale_kernel_2d,
        out_shape=jax.ShapeDtypeStruct((B, M), x.dtype),
        grid_spec=pltpu.PrefetchScalarGridSpec(
            num_scalar_prefetch=0, grid=grid,
            in_specs=[blk, pl.BlockSpec((bt, 1), lambda i, j: (i, 0))],
            out_specs=blk),
        compiler_params=cparams,
        input_output_aliases={0: 0},
    )(x.reshape(B, M), scale.reshape(B, 1))
    return out.reshape(shape)


# ----------------------------- custom VJPs -----------------------------------

@jax.custom_vjp
def _scaled_mul(x, scale):
    return _scaled_mul_impl(x, scale)


def _scaled_mul_fwd(x, scale):
    return _scaled_mul_impl(x, scale), scale


def _scaled_mul_bwd(scale, g):
    return _scaled_mul_impl(g, scale), jnp.zeros_like(scale)


_scaled_mul.defvjp(_scaled_mul_fwd, _scaled_mul_bwd)


@jax.custom_vjp
def _scaled_residual_add(res, x, scale):
    return _scaled_residual_add_impl(res, x, scale)


def _scaled_residual_add_fwd(res, x, scale):
    return _scaled_residual_add_impl(res, x, scale), scale


def _scaled_residual_add_bwd(scale, g):
    return g, _scaled_mul_impl(g, scale), jnp.zeros_like(scale)


_scaled_residual_add.defvjp(_scaled_residual_add_fwd, _scaled_residual_add_bwd)


# ----------------------------- public API ------------------------------------

def _drop_path_scale(key, batch, drop_prob):
    """Per-sample scale floor(keep_prob + U[0,1)) / keep_prob, kept in float32."""
    if drop_prob == 0.0:
        return jnp.ones((batch,), jnp.float32)
    keep_prob = 1.0 - float(drop_prob)
    r = jax.random.uniform(key, (batch,), dtype=jnp.float32)
    return jnp.floor(keep_prob + r) / keep_prob


def drop_path(x, key, drop_prob: float = 0.0):
    """Pallas DropPath forward (matches the torch module): x: (B, ...)."""
    if drop_prob == 0.0:
        return x
    return _scaled_mul(x, _drop_path_scale(key, x.shape[0], drop_prob))


def residual_drop_path(shortcut, x, key, drop_prob: float = 0.0):
    """Fused CSWinBlock residual hot path: shortcut + drop_path(x)."""
    scale = _drop_path_scale(key, x.shape[0], drop_prob)
    return _scaled_residual_add(shortcut.astype(x.dtype), x, scale)


# ----------------------------- references & tests ----------------------------

def _ref_drop_path(x, key, drop_prob):
    if drop_prob == 0.0:
        return x
    s = _drop_path_scale(key, x.shape[0], drop_prob)
    s = s.reshape((x.shape[0],) + (1,) * (x.ndim - 1))
    return (x.astype(jnp.float32) * s).astype(x.dtype)


def _ref_residual_drop_path(shortcut, x, key, drop_prob):
    s = _drop_path_scale(key, x.shape[0], drop_prob)
    s = s.reshape((x.shape[0],) + (1,) * (x.ndim - 1))
    return (shortcut.astype(jnp.float32) + x.astype(jnp.float32) * s).astype(x.dtype)


if __name__ == "__main__":
    keys = jax.random.split(jax.random.PRNGKey(0), 8)
    drop_prob = 0.3

    # 1) CSwin-like (B, N=H*W, C) with C < 128: lane-dense 3D view (M % 128 == 0).
    B, N, C = 2, 64, 32
    x = jax.random.normal(keys[0], (B, N, C), dtype=jnp.float32)
    short = jax.random.normal(keys[1], (B, N, C), dtype=jnp.float32)

    ref = _ref_drop_path(x, keys[2], drop_prob)
    out = jax.block_until_ready(drop_path(x, keys[2], drop_prob))
    assert jnp.allclose(out, ref, rtol=1e-6, atol=1e-6), "drop_path mismatch (test 1)"

    ref_f = _ref_residual_drop_path(short, x, keys[2], drop_prob)
    out_f = jax.block_until_ready(residual_drop_path(short, x, keys[2], drop_prob))
    assert jnp.allclose(out_f, ref_f, rtol=1e-6, atol=1e-6), "fused mismatch (test 1)"

    # 2) bf16, batch not a multiple of 8, larger slab (still fully dense tiles).
    B2, N2, C2 = 4, 256, 96
    x2 = jax.random.normal(keys[3], (B2, N2, C2), dtype=jnp.bfloat16)
    s2 = jax.random.normal(keys[4], (B2, N2, C2), dtype=jnp.bfloat16)
    ref2 = _ref_residual_drop_path(s2, x2, keys[5], drop_prob)
    out2 = jax.block_until_ready(residual_drop_path(s2, x2, keys[5], drop_prob))
    assert jnp.allclose(out2.astype(jnp.float32), ref2.astype(jnp.float32),
                        rtol=1e-2, atol=1e-2), "bf16 fused mismatch (test 2)"

    # 3) Rare fallback: flattened per-sample size not a multiple of 128 (no pad).
    B3, N3, C3 = 2, 10, 20
    x3 = jax.random.normal(keys[6], (B3, N3, C3), dtype=jnp.float32)
    s3 = jax.random.normal(keys[7], (B3, N3, C3), dtype=jnp.float32)
    ref3 = _ref_residual_drop_path(s3, x3, keys[5], drop_prob)
    out3 = jax.block_until_ready(residual_drop_path(s3, x3, keys[5], drop_prob))
    assert jnp.allclose(out3, ref3, rtol=1e-6, atol=1e-6), "fused fallback mismatch (test 3)"
    ref3b = _ref_drop_path(x3, keys[5], drop_prob)
    out3b = jax.block_until_ready(drop_path(x3, keys[5], drop_prob))
    assert jnp.allclose(out3b, ref3b, rtol=1e-6, atol=1e-6), "drop_path fallback mismatch (test 3)"

    # 4) drop_prob == 0 (eval): identity / plain residual add.
    out0 = jax.block_until_ready(drop_path(x, keys[2], 0.0))
    assert jnp.array_equal(out0, x)
    out0f = jax.block_until_ready(residual_drop_path(short, x, keys[2], 0.0))
    assert jnp.allclose(out0f, short + x, rtol=1e-6, atol=1e-6)

    # 5) custom_vjp: backward reuses the same streaming kernel.
    def loss(s_, x_):
        return jnp.sum(residual_drop_path(s_, x_, keys[2], drop_prob))

    g_short, g_x = jax.grad(loss, argnums=(0, 1))(short, x)
    g_short, g_x = jax.block_until_ready((g_short, g_x))
    scale = _drop_path_scale(keys[2], B, drop_prob).reshape(B, 1, 1)
    assert jnp.allclose(g_short, jnp.ones_like(short), rtol=1e-6, atol=1e-6), "vjp shortcut grad"
    assert jnp.allclose(g_x, jnp.broadcast_to(scale, x.shape), rtol=1e-6, atol=1e-6), "vjp branch grad"

    print("KERNEL_OK")
</pallas_src>

<mosaic_0001>
module attributes {stable_mosaic.version = 11 : i64} {
  func.func @_scale_kernel_3d(%arg0: i32, %arg1: i32, %arg2: memref<2xf32, #tpu.memory_space<smem>>, %arg3: memref<1x16x128xf32, #tpu.memory_space<vmem>>, %arg4: memref<1x16x128xf32, #tpu.memory_space<vmem>>) attributes {dimension_semantics = [#tpu.dimension_semantics<parallel>, #tpu.dimension_semantics<parallel>], iteration_bounds = array<i64: 2, 1>, scalar_prefetch = 1 : i64, scratch_operands = 0 : i64, tpu.core_type = #tpu.core_type<tc>, window_params = [{transform_indices = @transform_0, window_bounds = array<i64: 1, 16, 128>}, {transform_indices = @transform_1, window_bounds = array<i64: 1, 16, 128>}]} {
    %0 = arith.index_cast %arg0 : i32 to index
    %1 = memref.load %arg2[%0] : memref<2xf32, #tpu.memory_space<smem>>
    %c0 = arith.constant 0 : index
    %c0_0 = arith.constant 0 : index
    %c0_1 = arith.constant 0 : index
    %2 = vector.load %arg3[%c0, %c0_0, %c0_1] : memref<1x16x128xf32, #tpu.memory_space<vmem>>, vector<1x16x128xf32>
    %3 = vector.broadcast %1 : f32 to vector<1x16x128xf32>
    %4 = arith.mulf %2, %3 : vector<1x16x128xf32>
    %c0_2 = arith.constant 0 : index
    %c0_3 = arith.constant 0 : index
    %c0_4 = arith.constant 0 : index
    %5 = vector.load %arg4[%c0_2, %c0_3, %c0_4] : memref<1x16x128xf32, #tpu.memory_space<vmem>>, vector<1x16x128xf32>
    tpu.vector_store %arg4[%c0_2, %c0_3, %c0_4], %4 {strides = array<i32>} : memref<1x16x128xf32, #tpu.memory_space<vmem>>, vector<1x16x128xf32>,
    return
  }
  func.func @transform_0(%arg0: i32, %arg1: i32, %arg2: memref<2xf32, #tpu.memory_space<smem>>) -> (i32, i32, i32) {
    %c0_i32 = arith.constant 0 : i32
    %c0_i32_0 = arith.constant 0 : i32
    return %arg0, %arg1, %c0_i32 : i32, i32, i32
  }
  func.func @transform_1(%arg0: i32, %arg1: i32, %arg2: memref<2xf32, #tpu.memory_space<smem>>) -> (i32, i32, i32) {
    %c0_i32 = arith.constant 0 : i32
    %c0_i32_0 = arith.constant 0 : i32
    return %arg0, %arg1, %c0_i32 : i32, i32, i32
  }
}

</mosaic_0001>

<bundles_post_ra>
// kernel: tpu_custom_call.1
= control target key start
LH: loop header
LB: loop body
LE: loop exit
PB: predicated region body
PF: predicated region fallthrough
CT: control target
= control target key end

     0   :  { %s475_s9 = smov [#allocation3]   ;;  %s647_s0 = inlined_call_operand.hbm [shape: f32[2], index: 0, kind: input, shape index: {}]   ;;  %s648_s1 = inlined_call_operand.hbm [shape: f32[2,16,128], index: 1, kind: input, shape index: {}]   ;;  %s649_s2 = inlined_call_operand.hbm [shape: f32[2,16,128], index: 2, kind: output, shape index: {}]  }
   0x1   :  { %8 = dma.hbm_to_smem %s647_s0, 16, %s475_s9, [#allocation2] }
   0x2   :  { %441 = dma.done.wait [#allocation2], 16 }
   0x3   :  { %442 = vsyncadd [#allocation2], 4294967280 }
   0x4   :  { %10 = sfence }
   0x5   :  { %11 = vsyncpa [#allocation5], 0 }
   0x6   :  { %13 = vsyncpa [#allocation5 + $0x1], 0 }
   0x7   :  { %14 = vsyncpa [#allocation6], 0 }
   0x8   :  { %16 = vsyncpa [#allocation6 + $0x1], 0  ;;  %s500_s12 = smov 0   ;;  %s502_s13 = smov 0  }
   0x9   :  { %s504_s14 = smov 0   ;;  %s506_s15 = smov 0  }
   0xa   :  { %s508_s16 = smov 0   ;;  %s510_s17 = smov 0  }
   0xb LB: > { %s271_s0 = sadd.s32 4294967295, %s473_s17   ;;  %s272_s18 = sadd.s32 4294967294, %s473_s17   ;;  %s473_s17 = sphi %s510_s17, %s22_s17   ;;  %s469_s16 = sphi %s508_s16, %s660_s16   ;;  %s465_s15 = sphi %s506_s15, %s659_s15   ;;  %s461_s14 = sphi %s504_s14, %s658_s14   ;;  %s457_s13 = sphi %s502_s13, %s657_s13   ;;  %s453_s12 = sphi %s500_s12, %s656_s12  }
   0xc   : > { %s34_s19 = sadd.s32 1, %s469_s16  ;;  %s43_s20 = sadd.s32 1, %s461_s14 }
   0xd   : > { %p36_p0 = scmp.ge.s32.totalorder %s34_s19, 2  ;;  %p50_p1 = scmp.ne.s32.totalorder %s461_s14, %s457_s13 }
   0xe   : > { %p51_p2 = scmp.eq.s32.totalorder %s473_s17, 0  ;;  %p56_p3 = scmp.ne.s32.totalorder %s457_s13, %s453_s12 }
   0xf   : > { %s662_s19 = smov (%p36_p0, %s34_s19), 0  ;;  %p57_p5 = scmp.eq.s32.totalorder %s271_s0, 0 }
  0x10   : > { %p541_p4 = por %p51_p2, %p50_p1  ;;  %s38_s22 = ssub.s32 %s469_s16, %s662_s19 }
  0x11   : > { %p82_p6 = scmp.eq.s32.totalorder %s271_s0, 1  ;;  %p41_p7 = scmp.eq.s32.totalorder %s38_s22, 0 }
  0x12   : > { %p547_p8 = por %p57_p5, %p56_p3  ;;  %p88_p10 = scmp.eq.s32.totalorder %s272_s18, 1 }
  0x13   : > { %p551_p9 = por %p82_p6, %p50_p1  ;;  %p300_p13 = scmp.lt.s32.totalorder %s473_s17, 2 }
  0x14   : > { %s556_s25 = scalar_select %p41_p7, %s461_s14, %s43_s20  }
  0x15   : > { %p558_p11 = por %p88_p10, %p56_p3  ;;  %s108_s27 = sand.u32 1, %s461_s14  }
  0x16   : > { %s275_s28 = sshll.u32 %s108_s27, 4  ;;  %s286_s29 = sshll.u32 %s469_s16, 8 }
  0x17   : > { %s120_s4 = scalar_lea.hbm %s648_s1, %s286_s29  ;;  %s112_s5 = scalar_lea.vmem [#allocation4], %s275_s28 }
  0x18   : > { %s121_s6 = sshll.u32 %s112_s5, 4  ;;  %p571_p0 = pnand %p300_p13, %p541_p4  ;;  %s122_s6 = int_to_ptr.vmem [resolvable:$true] %s121_s6 }
  0x19   : > { %p278_p1 = scmp.ge.s32.totalorder %s473_s17, 1  ;;  %s109_s8 = scalar_lea.sflag [#allocation5], %s108_s27 }
  0x1a   : > { %p365_p2 = pneg %p571_p0  ;;  %s376_s9 = scalar_lea.vmem %s122_s6, 256 }
  0x1b   : > { %p377_p3 = scmp.ne.s32.totalorder %s122_s6, %s376_s9  ;;  %s476_s10 = smov [#allocation4]  }
  0x1c   : > { %s381_s11 = sshll.u32 %s476_s10, 4  ;;  %s382_s11 = int_to_ptr.vmem [resolvable:$false] %s381_s11 }
  0x1d   : > { %p379_p5 = pnand %p377_p3, %p365_p2  ;;  %s383_s0 = scalar_lea.vmem %s382_s11, 512 }
  0x1e   : > { %p384_p7 = scmp.lt.s32.totalorder %s122_s6, %s382_s11  ;;  %p385_p10 = scmp.lt.s32.totalorder %s383_s0, %s376_s9 }
  0x1f   : > { %p380_p6 = pneg %p379_p5 }
  0x20   : > { %p386_p12 = por %p385_p10, %p384_p7 }
  0x22   : > { %p387_p4 = pnand %p386_p12, %p380_p6 }
  0x24   : > { %390 = shalt.err (!%p387_p4)
}
  0x25   : > { %s477_s18 = smov 128   ;;  %s478_s20 = smov 8  }
  0x26   : > { %295 = dma.hbm_to_vmem [thread:$0]  (!%p571_p0), %s120_s4, 256, %s122_s6, %s109_s8, %s477_s18, %s477_s18, %s478_s20  }
  0x27   : > { %p129_p13 = scmp.lt.s32.totalorder %s473_s17, 3 }
  0x29   : > { %p130_p2 = pnand %p278_p1, %p129_p13 }
  0x2a   : > { %s584_s21 = sand.u32 (!%p130_p2), 1, %s457_s13  }
  0x2b   : > { %133 = sbr.rel (%p130_p2) target bundleno = 74 (0x4a), region = 24  ;;  %s279_s22 = sshll.u32 (!%p130_p2), %s584_s21, 4 }
  0x2c   : > { %s136_s27 = scalar_lea.sflag (!%p130_p2), [#allocation5], %s584_s21  ;;  %s139_s28 = scalar_lea.vmem (!%p130_p2), [#allocation4], %s279_s22 }
  0x30   : > { %444 = dma.done.wait (%p547_p8), %s136_s27, 256  }
  0x31   : > { %446 = vsyncadd (%p547_p8), %s136_s27, 4294967040  ;;  %s160_s29 = sld [smem:[#allocation3 + %s465_s15]]  ;;  %s157_s30 = scalar_lea.vmem [#allocation7], %s279_s22  ;;  %v161_v0 = vld [vmem:[%s139_s28] sm:$0xff]  ;;  %v162_v2 = vld [vmem:[%s139_s28 + $0x8] sm:$0xff] }
  0x32   : > { %s184_s3 = sshll.u32 %s157_s30, 4  ;;  %s287_s4 = sshll.u32 %s465_s15, 8  ;;  %s594_s3 = int_to_ptr.vmem [resolvable:$true] %s184_s3 }
  0x33   : > { %s599_s23 = scalar_lea.hbm %s649_s2, %s287_s4  ;;  %s169_s7 = scalar_lea.sflag [#allocation6], %s584_s21 }
  0x34   : > { %s391_s8 = scalar_lea.vmem %s594_s3, 256  ;;  %s479_s15 = smov [#allocation7]  }
  0x35   : > { %p392_p8 = scmp.ne.s32.totalorder %s594_s3, %s391_s8  ;;  %s395_s9 = sshll.u32 %s479_s15, 4  ;;  %s396_s9 = int_to_ptr.vmem [resolvable:$false] %s395_s9 }
  0x36   : > { %s397_s10 = scalar_lea.vmem %s396_s9, 512  ;;  %p398_p1 = scmp.lt.s32.totalorder %s594_s3, %s396_s9 }
  0x37   : > { %v163_v1 = vstv %s160_s29  ;;  %p393_p12 = pnand %p392_p8, %p551_p9  ;;  %p399_p3 = scmp.lt.s32.totalorder %s397_s10, %s391_s8 }
  0x38   : > { %v164_v3 = vmul.f32 %v163_v1, %v161_v0  ;;  %v165_v4 = vmul.f32 %v163_v1, %v162_v2 }
  0x39   : > { %p394_p0 = pneg %p393_p12  ;;  %p400_p5 = por %p399_p3, %p398_p1 }
  0x3a   : > { %166 = vst [vmem:[%s157_s30] sm:$0xff] %v164_v3  ;;  %167 = vst [vmem:[%s157_s30 + $0x8] sm:$0xff] %v165_v4 }
  0x3b   : > { %p401_p6 = pnand %p400_p5, %p394_p0 }
  0x3d   : > { %404 = shalt.err (!%p401_p6)
}
  0x3e   : > { %s405_s11 = scalar_lea.hbm %s599_s23, 256  ;;  %s409_s20 = scalar_lea.hbm %s649_s2, 512 }
  0x3f   : > { %p406_p7 = scmp.ne.s32.totalorder %s599_s23, %s405_s11  ;;  %p410_p13 = scmp.lt.s32.totalorder %s599_s23, %s649_s2 }
  0x40   : > { %p411_p2 = scmp.lt.s32.totalorder %s409_s20, %s405_s11 }
  0x41   : > { %p407_p10 = pnand %p406_p7, %p551_p9 }
  0x42   : > { %p412_p8 = por %p411_p2, %p410_p13 }
  0x43   : > { %p408_p4 = pneg %p407_p10 }
  0x45   : > { %p413_p12 = pnand %p412_p8, %p408_p4 }
  0x47   : > { %416 = shalt.err (!%p413_p12)
}
  0x48   : > { %s480_s28 = smov 128   ;;  %s481_s29 = smov 8  }
  0x49   : > { %290 = dma.vmem_to_hbm [thread:$0]  (%p551_p9), %s594_s3, 256, %s599_s23, %s169_s7, %s480_s28, %s480_s28, %s481_s29  }
  0x4a PF: > { %s199_s30 = sand.u32 1, %s453_s12   ;;  %p655_p0 = scmp.ge.s32.totalorder %s473_s17, 2 }
  0x4b   : > { %s200_s4 = scalar_lea.sflag [#allocation6], %s199_s30 }
  0x4c   : > { %p297_p1 = pnand %p655_p0, %p558_p11 }
  0x4e   : > { %p298_p3 = pneg %p297_p1 }
  0x50   : > { %448 = dma.done.wait (%p298_p3), %s200_s4, 256  }
  0x51   : > { %450 = vsyncadd (%p298_p3), %s200_s4, 4294967040  ;;  %s22_s17 = sadd.s32 1, %s473_s17   ;;  %s656_s12 = smov %s457_s13 }
  0x52   : > { %p19_p5 = scmp.ge.s32.totalorder %s22_s17, 4   ;;  %s657_s13 = smov %s461_s14 }
  0x53   : > { %s658_s14 = smov %s556_s25  ;;  %s659_s15 = smov %s469_s16 }
  0x54   : > { %s660_s16 = smov %s662_s19  ;;  %21 = sbr.rel (!%p19_p5) target bundleno = 11 (0xb), region = 69 }
  0x59   :  { %205 = vsyncpa [#allocation5], 1 }
  0x5a   :  { %207 = vsyncpa [#allocation5 + $0x1], 1 }
  0x5b   :  { %208 = vsyncpa [#allocation6], 1 }
  0x5c   :  { %210 = vsyncpa [#allocation6 + $0x1], 1 }

</bundles_post_ra>
